<compile_context>
chip_gen: v7x
topology: tpu7x:2x2x1
jax: 0.10.0
libtpu: 0.0.40
codegen_flags: <defaults>
</compile_context>

<pallas_src>
import functools

import jax
import jax.numpy as jnp
from jax import lax
from jax.experimental import pallas as pl
from jax.experimental.pallas import tpu as pltpu

LEAKY_SLOPE = 0.2
BN_EPS = 1e-5


def _round_up(x, m):
    return (x + m - 1) // m * m


def _conv_affine_stats_kernel(x_ref, w_ref, cb_ref, s_ref, b_ref, m_ref,
                              y_ref, sum_ref, sq_ref, patch_ref,
                              *, shifts, cin_p, b_blk):
    """Per grid step (b_blk images x one Cout tile):
      1. build a (9*Cin_p, L) im2col patch in VMEM (9 shifted lane windows),
      2. ONE fused K=9*Cin_p bf16 MXU matmul -> f32 accumulator,
      3. conditional affine  y = (conv + bias) * s + b,
      4. lane-dense bf16 store of y,
      5. per-image per-channel sum / sum-of-squares over valid pixels (f32).
    """
    L = y_ref.shape[-1]                       # lane-padded flat spatial length
    mask = m_ref[...]                         # (1, L) f32 valid-pixel mask
    w = w_ref[...]                            # (Cout_t, 9*Cin_p) bf16
    cb = cb_ref[...]                          # (Cout_t, 1) f32 conv bias

    for b in range(b_blk):                    # static, unrolled
        # ---- patch build: shifted windows hoisted into one explicit step ----
        for t, sh in enumerate(shifts):
            patch_ref[t * cin_p:(t + 1) * cin_p, :] = x_ref[b, :, sh:sh + L]

        # ---- single fused-K matmul on the MXU, f32 accumulation ----
        acc = jnp.dot(w, patch_ref[...], preferred_element_type=jnp.float32)

        # ---- conditional affine: y = (conv + bias) * s + b ----
        s_col = s_ref[b]                      # (Cout_t, 1)
        c0 = cb * s_col + b_ref[b]            # fold conv-bias into the shift
        y = acc * s_col + c0                  # (Cout_t, L) f32

        y_ref[b] = y.astype(y_ref.dtype)      # bf16, lane-dense unmasked store

        # ---- BN partial stats over valid (non-padding) pixels ----
        yv = y * mask
        sum_ref[b] = jnp.sum(yv, axis=1, keepdims=True)
        sq_ref[b] = jnp.sum(y * yv, axis=1, keepdims=True)   # mask^2 == mask


def vgg_layer_forward(x_nchw, cond, params):
    (conv_w, conv_b, fc1_w, fc1_b, fc2_w, fc2_b, gamma, beta) = params
    N, Cin, H, W = x_nchw.shape
    Cout = conv_w.shape[0]
    f32 = jnp.float32
    bf16 = jnp.bfloat16

    Hp, Wp = H + 2, W + 2
    L_out = Hp * Wp                           # per-image padded-grid flat length
    L_out_pad = _round_up(L_out, 128)         # lane-aligned output width
    max_shift = 2 * Wp + 2
    L_in_pad = _round_up(L_out_pad + max_shift, 128)
    shifts = tuple(kh * Wp + kw for kh in range(3) for kw in range(3))
    Cin_p = _round_up(Cin, 8)                 # sublane-aligned patch row blocks

    # ---- conditioning path (tiny matmuls + softplus) stays in XLA ----
    s = jax.nn.softplus(cond.astype(f32) @ fc1_w.T.astype(f32) + fc1_b.astype(f32))
    bsh = cond.astype(f32) @ fc2_w.T.astype(f32) + fc2_b.astype(f32)
    s3 = s[:, :, None]                        # (N, Cout, 1)
    b3 = bsh[:, :, None]                      # (N, Cout, 1)

    # ---- activation: cast to bf16 BEFORE padding (halves pad traffic) ----
    xp = jnp.pad(x_nchw.astype(bf16), ((0, 0), (0, 0), (1, 1), (1, 1)))
    xf = xp.reshape(N, Cin, L_out)
    xf = jnp.pad(xf, ((0, 0), (0, Cin_p - Cin), (0, L_in_pad - L_out)))
    # xf: (N, Cin_p, L_in_pad) bf16

    # conv weight (Cout,Cin,3,3) -> (Cout, 9*Cin_p); column = (kh*3+kw)*Cin_p + c
    wt = jnp.transpose(conv_w, (0, 2, 3, 1))              # (Cout, 3, 3, Cin)
    wt = jnp.pad(wt, ((0, 0), (0, 0), (0, 0), (0, Cin_p - Cin)))
    w_flat = wt.reshape(Cout, 9 * Cin_p).astype(bf16)
    cb2 = conv_b.astype(f32).reshape(Cout, 1)

    # valid-pixel mask on the lane-padded flattened padded grid
    o_idx = jnp.arange(L_out_pad, dtype=jnp.int32)
    valid = (o_idx < L_out) & ((o_idx % Wp) < W) & ((o_idx // Wp) < H)
    mask = valid.astype(f32)[None, :]         # (1, L_out_pad)

    # ---- tiling: pack small batches per step, tile Cout when it is large ----
    per_img_bytes = Cin_p * L_in_pad * 2 + Cout * L_out_pad * 2
    b_blk = 1
    for d in range(N, 0, -1):
        if N % d == 0 and d * per_img_bytes <= (2 << 20):
            b_blk = d
            break
    cout_tile = Cout if Cout <= 128 else 128
    assert Cout % cout_tile == 0
    grid = (N // b_blk, Cout // cout_tile)

    # explicit scoped-VMEM budget (v5e default is only 16 MiB; v7x phys is 64)
    blk_bytes = (b_blk * Cin_p * L_in_pad * 2            # x block (bf16)
                 + cout_tile * 9 * Cin_p * 2              # weights (bf16)
                 + b_blk * cout_tile * L_out_pad * 2      # y block (bf16)
                 + L_out_pad * 4 + 16 * cout_tile)        # mask + small columns
    scratch_bytes = (9 * Cin_p * L_out_pad * 2            # im2col patch
                     + 4 * cout_tile * L_out_pad * 4)     # f32 temporaries
    vmem_limit = int(min(max(2 * blk_bytes + scratch_bytes + (4 << 20), 32 << 20),
                         64 << 20))

    conv_flops = 2 * N * L_out_pad * 9 * Cin_p * Cout
    bytes_acc = (xf.size * 2 + w_flat.size * 2
                 + N * Cout * L_out_pad * 2 + 2 * N * Cout * 4)

    kernel = functools.partial(_conv_affine_stats_kernel,
                               shifts=shifts, cin_p=Cin_p, b_blk=b_blk)

    y_t, sums, sqs = pl.pallas_call(
        kernel,
        grid=grid,
        in_specs=(
            pl.BlockSpec((b_blk, Cin_p, L_in_pad), lambda n, j: (n, 0, 0)),   # x
            pl.BlockSpec((cout_tile, 9 * Cin_p), lambda n, j: (j, 0)),        # conv W
            pl.BlockSpec((cout_tile, 1), lambda n, j: (j, 0)),                # conv b
            pl.BlockSpec((b_blk, cout_tile, 1), lambda n, j: (n, j, 0)),      # s
            pl.BlockSpec((b_blk, cout_tile, 1), lambda n, j: (n, j, 0)),      # b
            pl.BlockSpec((1, L_out_pad), lambda n, j: (0, 0)),                # mask
        ),
        out_specs=(
            pl.BlockSpec((b_blk, cout_tile, L_out_pad), lambda n, j: (n, j, 0)),
            pl.BlockSpec((b_blk, cout_tile, 1), lambda n, j: (n, j, 0)),
            pl.BlockSpec((b_blk, cout_tile, 1), lambda n, j: (n, j, 0)),
        ),
        out_shape=(
            jax.ShapeDtypeStruct((N, Cout, L_out_pad), bf16),   # y (bf16)
            jax.ShapeDtypeStruct((N, Cout, 1), f32),            # per-image sum
            jax.ShapeDtypeStruct((N, Cout, 1), f32),            # per-image sumsq
        ),
        scratch_shapes=[pltpu.VMEM((9 * Cin_p, L_out_pad), bf16)],
        compiler_params=pltpu.CompilerParams(
            dimension_semantics=("parallel", "parallel"),
            vmem_limit_bytes=vmem_limit),
        cost_estimate=pl.CostEstimate(flops=conv_flops, transcendentals=0,
                                      bytes_accessed=bytes_acc),
    )(xf, w_flat, cb2, s3, b3, mask)

    # ---- BatchNorm2d (training) batch stats over N*H*W valid pixels (tiny) ----
    # NOTE: E[y^2]-mean^2 in f32; clamped at 0 (see review correctness note).
    cnt = float(N * H * W)
    mean = jnp.sum(sums[:, :, 0], axis=0) / cnt                       # (Cout,)
    var = jnp.maximum(jnp.sum(sqs[:, :, 0], axis=0) / cnt - mean * mean, 0.0)
    inv = lax.rsqrt(var + BN_EPS)
    bn_scale = gamma.astype(f32) * inv
    bn_shift = beta.astype(f32) - mean * bn_scale

    # ---- epilogue: BN affine + LeakyReLU fused by XLA with the unpad/reshape
    # (one read of bf16 y + one write of the final NCHW output; no extra
    #  Pallas pass and no extra HBM round trip).
    y4 = y_t[:, :, :L_out].reshape(N, Cout, Hp, Wp)[:, :, :H, :W].astype(f32)
    yh = y4 * bn_scale[None, :, None, None] + bn_shift[None, :, None, None]
    return jnp.where(yh > 0, yh, LEAKY_SLOPE * yh)


def vgg_layer_ref(x_nchw, cond, params):
    """Pure-JAX reference mirroring the PyTorch forward (module in train mode)."""
    (conv_w, conv_b, fc1_w, fc1_b, fc2_w, fc2_b, gamma, beta) = params
    conv = lax.conv_general_dilated(
        x_nchw, conv_w, window_strides=(1, 1), padding="SAME",
        dimension_numbers=("NCHW", "OIHW", "NCHW"))
    conv = conv + conv_b[None, :, None, None]
    s = jax.nn.softplus(cond @ fc1_w.T + fc1_b)[:, :, None, None]
    b = (cond @ fc2_w.T + fc2_b)[:, :, None, None]
    y = conv * s + b
    mean = y.mean(axis=(0, 2, 3), keepdims=True)
    var = ((y - mean) ** 2).mean(axis=(0, 2, 3), keepdims=True)
    yh = (y - mean) * lax.rsqrt(var + BN_EPS)
    yh = yh * gamma[None, :, None, None] + beta[None, :, None, None]
    return jnp.where(yh > 0, yh, LEAKY_SLOPE * yh)


if __name__ == "__main__":
    key = jax.random.PRNGKey(0)
    N, Cin, H, W = 2, 4, 16, 16        # batch, nin, spatial
    Cout, cond_dim = 8, 16             # nout, cond_dim

    ks = jax.random.split(key, 6)
    x = jax.random.normal(ks[0], (N, Cin, H, W), jnp.float32)
    cond = jax.random.normal(ks[1], (N, cond_dim), jnp.float32)

    # deterministic synthetic parameters (shapes from vgg_layer.__init__)
    conv_w = jax.random.normal(ks[2], (Cout, Cin, 3, 3), jnp.float32) * 0.1
    conv_b = jax.random.normal(ks[3], (Cout,), jnp.float32) * 0.1
    fc1_w = jax.random.normal(ks[4], (Cout, cond_dim), jnp.float32) * 0.1
    fc1_b = jnp.zeros((Cout,), jnp.float32)
    fc2_w = jax.random.normal(ks[5], (Cout, cond_dim), jnp.float32) * 0.1
    fc2_b = jnp.zeros((Cout,), jnp.float32)
    gamma = jnp.ones((Cout,), jnp.float32)   # BatchNorm2d default affine init
    beta = jnp.zeros((Cout,), jnp.float32)
    params = (conv_w, conv_b, fc1_w, fc1_b, fc2_w, fc2_b, gamma, beta)

    out = jax.block_until_ready(vgg_layer_forward(x, cond, params))
    ref = vgg_layer_ref(x, cond, params)

    assert out.shape == (N, Cout, H, W)
    assert bool(jnp.all(jnp.isfinite(out)))
    # bf16 MXU operands + bf16 intermediate y (f32 accumulation / BN math)
    # vs. pure-f32 reference -> bf16-level tolerance.
    max_err = float(jnp.max(jnp.abs(out - ref)))
    assert bool(jnp.allclose(out, ref, atol=4e-2, rtol=4e-2)), max_err
    print("KERNEL_OK")
</pallas_src>

<mosaic_0001>
module attributes {stable_mosaic.version = 11 : i64} {
  func.func @_conv_affine_stats_kernel(%arg0: i32, %arg1: i32, %arg2: memref<2x8x512xbf16, #tpu.memory_space<vmem>>, %arg3: memref<8x72xbf16, #tpu.memory_space<vmem>>, %arg4: memref<8x1xf32, #tpu.memory_space<vmem>>, %arg5: memref<2x8x1xf32, #tpu.memory_space<vmem>>, %arg6: memref<2x8x1xf32, #tpu.memory_space<vmem>>, %arg7: memref<1x384xf32, #tpu.memory_space<vmem>>, %arg8: memref<2x8x384xbf16, #tpu.memory_space<vmem>>, %arg9: memref<2x8x1xf32, #tpu.memory_space<vmem>>, %arg10: memref<2x8x1xf32, #tpu.memory_space<vmem>>, %arg11: memref<72x384xbf16, #tpu.memory_space<vmem>>) attributes {dimension_semantics = [#tpu.dimension_semantics<parallel>, #tpu.dimension_semantics<parallel>], iteration_bounds = array<i64: 1, 1>, scalar_prefetch = 0 : i64, scratch_operands = 1 : i64, tpu.core_type = #tpu.core_type<tc>, window_params = [{transform_indices = @transform_0, window_bounds = array<i64: 2, 8, 512>}, {transform_indices = @transform_1, window_bounds = array<i64: 8, 72>}, {transform_indices = @transform_2, window_bounds = array<i64: 8, 1>}, {transform_indices = @transform_3, window_bounds = array<i64: 2, 8, 1>}, {transform_indices = @transform_4, window_bounds = array<i64: 2, 8, 1>}, {pipeline_mode = #tpu.pipeline_mode<synchronous>, transform_indices = @transform_5, window_bounds = array<i64: 1, 384>}, {transform_indices = @transform_6, window_bounds = array<i64: 2, 8, 384>}, {transform_indices = @transform_7, window_bounds = array<i64: 2, 8, 1>}, {transform_indices = @transform_8, window_bounds = array<i64: 2, 8, 1>}]} {
    %c0 = arith.constant 0 : index
    %c0_0 = arith.constant 0 : index
    %0 = vector.load %arg7[%c0, %c0_0] : memref<1x384xf32, #tpu.memory_space<vmem>>, vector<1x384xf32>
    %c0_1 = arith.constant 0 : index
    %c0_2 = arith.constant 0 : index
    %1 = vector.load %arg3[%c0_1, %c0_2] : memref<8x72xbf16, #tpu.memory_space<vmem>>, vector<8x72xbf16>
    %c0_3 = arith.constant 0 : index
    %c0_4 = arith.constant 0 : index
    %2 = vector.load %arg4[%c0_3, %c0_4] : memref<8x1xf32, #tpu.memory_space<vmem>>, vector<8x1xf32>
    %c0_5 = arith.constant 0 : index
    %c0_6 = arith.constant 0 : index
    %c0_7 = arith.constant 0 : index
    %3 = vector.load %arg2[%c0_5, %c0_6, %c0_7] : memref<2x8x512xbf16, #tpu.memory_space<vmem>>, vector<1x8x384xbf16>
    %4 = vector.shape_cast %3 : vector<1x8x384xbf16> to vector<8x384xbf16>
    %c0_8 = arith.constant 0 : index
    %c0_9 = arith.constant 0 : index
    %5 = vector.load %arg11[%c0_8, %c0_9] : memref<72x384xbf16, #tpu.memory_space<vmem>>, vector<8x384xbf16>
    tpu.vector_store %arg11[%c0_8, %c0_9], %4 {strides = array<i32>} : memref<72x384xbf16, #tpu.memory_space<vmem>>, vector<8x384xbf16>,
    %c0_10 = arith.constant 0 : index
    %c0_11 = arith.constant 0 : index
    %c1 = arith.constant 1 : index
    %6 = vector.load %arg2[%c0_10, %c0_11, %c1] : memref<2x8x512xbf16, #tpu.memory_space<vmem>>, vector<1x8x384xbf16>
    %7 = vector.shape_cast %6 : vector<1x8x384xbf16> to vector<8x384xbf16>
    %c8 = arith.constant 8 : index
    %c0_12 = arith.constant 0 : index
    %8 = vector.load %arg11[%c8, %c0_12] : memref<72x384xbf16, #tpu.memory_space<vmem>>, vector<8x384xbf16>
    tpu.vector_store %arg11[%c8, %c0_12], %7 {strides = array<i32>} : memref<72x384xbf16, #tpu.memory_space<vmem>>, vector<8x384xbf16>,
    %c0_13 = arith.constant 0 : index
    %c0_14 = arith.constant 0 : index
    %c2 = arith.constant 2 : index
    %9 = vector.load %arg2[%c0_13, %c0_14, %c2] : memref<2x8x512xbf16, #tpu.memory_space<vmem>>, vector<1x8x384xbf16>
    %10 = vector.shape_cast %9 : vector<1x8x384xbf16> to vector<8x384xbf16>
    %c16 = arith.constant 16 : index
    %c0_15 = arith.constant 0 : index
    %11 = vector.load %arg11[%c16, %c0_15] : memref<72x384xbf16, #tpu.memory_space<vmem>>, vector<8x384xbf16>
    tpu.vector_store %arg11[%c16, %c0_15], %10 {strides = array<i32>} : memref<72x384xbf16, #tpu.memory_space<vmem>>, vector<8x384xbf16>,
    %c0_16 = arith.constant 0 : index
    %c0_17 = arith.constant 0 : index
    %c18 = arith.constant 18 : index
    %12 = vector.load %arg2[%c0_16, %c0_17, %c18] : memref<2x8x512xbf16, #tpu.memory_space<vmem>>, vector<1x8x384xbf16>
    %13 = vector.shape_cast %12 : vector<1x8x384xbf16> to vector<8x384xbf16>
    %c24 = arith.constant 24 : index
    %c0_18 = arith.constant 0 : index
    %14 = vector.load %arg11[%c24, %c0_18] : memref<72x384xbf16, #tpu.memory_space<vmem>>, vector<8x384xbf16>
    tpu.vector_store %arg11[%c24, %c0_18], %13 {strides = array<i32>} : memref<72x384xbf16, #tpu.memory_space<vmem>>, vector<8x384xbf16>,
    %c0_19 = arith.constant 0 : index
    %c0_20 = arith.constant 0 : index
    %c19 = arith.constant 19 : index
    %15 = vector.load %arg2[%c0_19, %c0_20, %c19] : memref<2x8x512xbf16, #tpu.memory_space<vmem>>, vector<1x8x384xbf16>
    %16 = vector.shape_cast %15 : vector<1x8x384xbf16> to vector<8x384xbf16>
    %c32 = arith.constant 32 : index
    %c0_21 = arith.constant 0 : index
    %17 = vector.load %arg11[%c32, %c0_21] : memref<72x384xbf16, #tpu.memory_space<vmem>>, vector<8x384xbf16>
    tpu.vector_store %arg11[%c32, %c0_21], %16 {strides = array<i32>} : memref<72x384xbf16, #tpu.memory_space<vmem>>, vector<8x384xbf16>,
    %c0_22 = arith.constant 0 : index
    %c0_23 = arith.constant 0 : index
    %c20 = arith.constant 20 : index
    %18 = vector.load %arg2[%c0_22, %c0_23, %c20] : memref<2x8x512xbf16, #tpu.memory_space<vmem>>, vector<1x8x384xbf16>
    %19 = vector.shape_cast %18 : vector<1x8x384xbf16> to vector<8x384xbf16>
    %c40 = arith.constant 40 : index
    %c0_24 = arith.constant 0 : index
    %20 = vector.load %arg11[%c40, %c0_24] : memref<72x384xbf16, #tpu.memory_space<vmem>>, vector<8x384xbf16>
    tpu.vector_store %arg11[%c40, %c0_24], %19 {strides = array<i32>} : memref<72x384xbf16, #tpu.memory_space<vmem>>, vector<8x384xbf16>,
    %c0_25 = arith.constant 0 : index
    %c0_26 = arith.constant 0 : index
    %c36 = arith.constant 36 : index
    %21 = vector.load %arg2[%c0_25, %c0_26, %c36] : memref<2x8x512xbf16, #tpu.memory_space<vmem>>, vector<1x8x384xbf16>
    %22 = vector.shape_cast %21 : vector<1x8x384xbf16> to vector<8x384xbf16>
    %c48 = arith.constant 48 : index
    %c0_27 = arith.constant 0 : index
    %23 = vector.load %arg11[%c48, %c0_27] : memref<72x384xbf16, #tpu.memory_space<vmem>>, vector<8x384xbf16>
    tpu.vector_store %arg11[%c48, %c0_27], %22 {strides = array<i32>} : memref<72x384xbf16, #tpu.memory_space<vmem>>, vector<8x384xbf16>,
    %c0_28 = arith.constant 0 : index
    %c0_29 = arith.constant 0 : index
    %c37 = arith.constant 37 : index
    %24 = vector.load %arg2[%c0_28, %c0_29, %c37] : memref<2x8x512xbf16, #tpu.memory_space<vmem>>, vector<1x8x384xbf16>
    %25 = vector.shape_cast %24 : vector<1x8x384xbf16> to vector<8x384xbf16>
    %c56 = arith.constant 56 : index
    %c0_30 = arith.constant 0 : index
    %26 = vector.load %arg11[%c56, %c0_30] : memref<72x384xbf16, #tpu.memory_space<vmem>>, vector<8x384xbf16>
    tpu.vector_store %arg11[%c56, %c0_30], %25 {strides = array<i32>} : memref<72x384xbf16, #tpu.memory_space<vmem>>, vector<8x384xbf16>,
    %c0_31 = arith.constant 0 : index
    %c0_32 = arith.constant 0 : index
    %c38 = arith.constant 38 : index
    %27 = vector.load %arg2[%c0_31, %c0_32, %c38] : memref<2x8x512xbf16, #tpu.memory_space<vmem>>, vector<1x8x384xbf16>
    %28 = vector.shape_cast %27 : vector<1x8x384xbf16> to vector<8x384xbf16>
    %c64 = arith.constant 64 : index
    %c0_33 = arith.constant 0 : index
    %29 = vector.load %arg11[%c64, %c0_33] : memref<72x384xbf16, #tpu.memory_space<vmem>>, vector<8x384xbf16>
    tpu.vector_store %arg11[%c64, %c0_33], %28 {strides = array<i32>} : memref<72x384xbf16, #tpu.memory_space<vmem>>, vector<8x384xbf16>,
    %c0_34 = arith.constant 0 : index
    %c0_35 = arith.constant 0 : index
    %30 = vector.load %arg11[%c0_34, %c0_35] : memref<72x384xbf16, #tpu.memory_space<vmem>>, vector<72x384xbf16>
    %cst = arith.constant dense<0.000000e+00> : vector<8x384xf32>
    %31 = tpu.matmul %1, %30, %cst {dimension_numbers = #tpu.dot_dimension_numbers<[1], [0], [0], [1], [0, 0, 1, 1], [], []>} : vector<8x72xbf16>, vector<72x384xbf16>, vector<8x384xf32> -> vector<8x384xf32>
    %c0_36 = arith.constant 0 : index
    %c0_37 = arith.constant 0 : index
    %c0_38 = arith.constant 0 : index
    %32 = vector.load %arg5[%c0_36, %c0_37, %c0_38] : memref<2x8x1xf32, #tpu.memory_space<vmem>>, vector<1x8x1xf32>
    %33 = vector.shape_cast %32 : vector<1x8x1xf32> to vector<8x1xf32>
    %34 = arith.mulf %2, %33 : vector<8x1xf32>
    %c0_39 = arith.constant 0 : index
    %c0_40 = arith.constant 0 : index
    %c0_41 = arith.constant 0 : index
    %35 = vector.load %arg6[%c0_39, %c0_40, %c0_41] : memref<2x8x1xf32, #tpu.memory_space<vmem>>, vector<1x8x1xf32>
    %36 = vector.shape_cast %35 : vector<1x8x1xf32> to vector<8x1xf32>
    %37 = arith.addf %34, %36 : vector<8x1xf32>
    %38 = vector.broadcast %33 : vector<8x1xf32> to vector<8x384xf32>
    %39 = arith.mulf %31, %38 : vector<8x384xf32>
    %40 = vector.broadcast %37 : vector<8x1xf32> to vector<8x384xf32>
    %41 = arith.addf %39, %40 : vector<8x384xf32>
    %42 = arith.truncf %41 : vector<8x384xf32> to vector<8x384xbf16>
    %c0_42 = arith.constant 0 : index
    %c0_43 = arith.constant 0 : index
    %c0_44 = arith.constant 0 : index
    %43 = vector.load %arg8[%c0_42, %c0_43, %c0_44] : memref<2x8x384xbf16, #tpu.memory_space<vmem>>, vector<1x8x384xbf16>
    %44 = vector.shape_cast %43 : vector<1x8x384xbf16> to vector<8x384xbf16>
    %45 = vector.shape_cast %42 : vector<8x384xbf16> to vector<1x8x384xbf16>
    tpu.vector_store %arg8[%c0_42, %c0_43, %c0_44], %45 {strides = array<i32>} : memref<2x8x384xbf16, #tpu.memory_space<vmem>>, vector<1x8x384xbf16>,
    %46 = vector.broadcast %0 : vector<1x384xf32> to vector<8x384xf32>
    %47 = arith.mulf %41, %46 : vector<8x384xf32>
    %cst_45 = arith.constant dense<0.000000e+00> : vector<8xf32>
    %48 = vector.multi_reduction <add>, %47, %cst_45 [1] : vector<8x384xf32> to vector<8xf32>
    %49 = vector.shape_cast %48 : vector<8xf32> to vector<8x1xf32>
    %c0_46 = arith.constant 0 : index
    %c0_47 = arith.constant 0 : index
    %c0_48 = arith.constant 0 : index
    %50 = vector.load %arg9[%c0_46, %c0_47, %c0_48] : memref<2x8x1xf32, #tpu.memory_space<vmem>>, vector<1x8x1xf32>
    %51 = vector.shape_cast %50 : vector<1x8x1xf32> to vector<8x1xf32>
    %52 = vector.shape_cast %49 : vector<8x1xf32> to vector<1x8x1xf32>
    tpu.vector_store %arg9[%c0_46, %c0_47, %c0_48], %52 {strides = array<i32>} : memref<2x8x1xf32, #tpu.memory_space<vmem>>, vector<1x8x1xf32>,
    %53 = arith.mulf %41, %47 : vector<8x384xf32>
    %cst_49 = arith.constant dense<0.000000e+00> : vector<8xf32>
    %54 = vector.multi_reduction <add>, %53, %cst_49 [1] : vector<8x384xf32> to vector<8xf32>
    %55 = vector.shape_cast %54 : vector<8xf32> to vector<8x1xf32>
    %c0_50 = arith.constant 0 : index
    %c0_51 = arith.constant 0 : index
    %c0_52 = arith.constant 0 : index
    %56 = vector.load %arg10[%c0_50, %c0_51, %c0_52] : memref<2x8x1xf32, #tpu.memory_space<vmem>>, vector<1x8x1xf32>
    %57 = vector.shape_cast %56 : vector<1x8x1xf32> to vector<8x1xf32>
    %58 = vector.shape_cast %55 : vector<8x1xf32> to vector<1x8x1xf32>
    tpu.vector_store %arg10[%c0_50, %c0_51, %c0_52], %58 {strides = array<i32>} : memref<2x8x1xf32, #tpu.memory_space<vmem>>, vector<1x8x1xf32>,
    %c1_53 = arith.constant 1 : index
    %c0_54 = arith.constant 0 : index
    %c0_55 = arith.constant 0 : index
    %59 = vector.load %arg2[%c1_53, %c0_54, %c0_55] : memref<2x8x512xbf16, #tpu.memory_space<vmem>>, vector<1x8x384xbf16>
    %60 = vector.shape_cast %59 : vector<1x8x384xbf16> to vector<8x384xbf16>
    %c0_56 = arith.constant 0 : index
    %c0_57 = arith.constant 0 : index
    %61 = vector.load %arg11[%c0_56, %c0_57] : memref<72x384xbf16, #tpu.memory_space<vmem>>, vector<8x384xbf16>
    tpu.vector_store %arg11[%c0_56, %c0_57], %60 {strides = array<i32>} : memref<72x384xbf16, #tpu.memory_space<vmem>>, vector<8x384xbf16>,
    %c1_58 = arith.constant 1 : index
    %c0_59 = arith.constant 0 : index
    %c1_60 = arith.constant 1 : index
    %62 = vector.load %arg2[%c1_58, %c0_59, %c1_60] : memref<2x8x512xbf16, #tpu.memory_space<vmem>>, vector<1x8x384xbf16>
    %63 = vector.shape_cast %62 : vector<1x8x384xbf16> to vector<8x384xbf16>
    %c8_61 = arith.constant 8 : index
    %c0_62 = arith.constant 0 : index
    %64 = vector.load %arg11[%c8_61, %c0_62] : memref<72x384xbf16, #tpu.memory_space<vmem>>, vector<8x384xbf16>
    tpu.vector_store %arg11[%c8_61, %c0_62], %63 {strides = array<i32>} : memref<72x384xbf16, #tpu.memory_space<vmem>>, vector<8x384xbf16>,
    %c1_63 = arith.constant 1 : index
    %c0_64 = arith.constant 0 : index
    %c2_65 = arith.constant 2 : index
    %65 = vector.load %arg2[%c1_63, %c0_64, %c2_65] : memref<2x8x512xbf16, #tpu.memory_space<vmem>>, vector<1x8x384xbf16>
    %66 = vector.shape_cast %65 : vector<1x8x384xbf16> to vector<8x384xbf16>
    %c16_66 = arith.constant 16 : index
    %c0_67 = arith.constant 0 : index
    %67 = vector.load %arg11[%c16_66, %c0_67] : memref<72x384xbf16, #tpu.memory_space<vmem>>, vector<8x384xbf16>
    tpu.vector_store %arg11[%c16_66, %c0_67], %66 {strides = array<i32>} : memref<72x384xbf16, #tpu.memory_space<vmem>>, vector<8x384xbf16>,
    %c1_68 = arith.constant 1 : index
    %c0_69 = arith.constant 0 : index
    %c18_70 = arith.constant 18 : index
    %68 = vector.load %arg2[%c1_68, %c0_69, %c18_70] : memref<2x8x512xbf16, #tpu.memory_space<vmem>>, vector<1x8x384xbf16>
    %69 = vector.shape_cast %68 : vector<1x8x384xbf16> to vector<8x384xbf16>
    %c24_71 = arith.constant 24 : index
    %c0_72 = arith.constant 0 : index
    %70 = vector.load %arg11[%c24_71, %c0_72] : memref<72x384xbf16, #tpu.memory_space<vmem>>, vector<8x384xbf16>
    tpu.vector_store %arg11[%c24_71, %c0_72], %69 {strides = array<i32>} : memref<72x384xbf16, #tpu.memory_space<vmem>>, vector<8x384xbf16>,
    %c1_73 = arith.constant 1 : index
    %c0_74 = arith.constant 0 : index
    %c19_75 = arith.constant 19 : index
    %71 = vector.load %arg2[%c1_73, %c0_74, %c19_75] : memref<2x8x512xbf16, #tpu.memory_space<vmem>>, vector<1x8x384xbf16>
    %72 = vector.shape_cast %71 : vector<1x8x384xbf16> to vector<8x384xbf16>
    %c32_76 = arith.constant 32 : index
    %c0_77 = arith.constant 0 : index
    %73 = vector.load %arg11[%c32_76, %c0_77] : memref<72x384xbf16, #tpu.memory_space<vmem>>, vector<8x384xbf16>
    tpu.vector_store %arg11[%c32_76, %c0_77], %72 {strides = array<i32>} : memref<72x384xbf16, #tpu.memory_space<vmem>>, vector<8x384xbf16>,
    %c1_78 = arith.constant 1 : index
    %c0_79 = arith.constant 0 : index
    %c20_80 = arith.constant 20 : index
    %74 = vector.load %arg2[%c1_78, %c0_79, %c20_80] : memref<2x8x512xbf16, #tpu.memory_space<vmem>>, vector<1x8x384xbf16>
    %75 = vector.shape_cast %74 : vector<1x8x384xbf16> to vector<8x384xbf16>
    %c40_81 = arith.constant 40 : index
    %c0_82 = arith.constant 0 : index
    %76 = vector.load %arg11[%c40_81, %c0_82] : memref<72x384xbf16, #tpu.memory_space<vmem>>, vector<8x384xbf16>
    tpu.vector_store %arg11[%c40_81, %c0_82], %75 {strides = array<i32>} : memref<72x384xbf16, #tpu.memory_space<vmem>>, vector<8x384xbf16>,
    %c1_83 = arith.constant 1 : index
    %c0_84 = arith.constant 0 : index
    %c36_85 = arith.constant 36 : index
    %77 = vector.load %arg2[%c1_83, %c0_84, %c36_85] : memref<2x8x512xbf16, #tpu.memory_space<vmem>>, vector<1x8x384xbf16>
    %78 = vector.shape_cast %77 : vector<1x8x384xbf16> to vector<8x384xbf16>
    %c48_86 = arith.constant 48 : index
    %c0_87 = arith.constant 0 : index
    %79 = vector.load %arg11[%c48_86, %c0_87] : memref<72x384xbf16, #tpu.memory_space<vmem>>, vector<8x384xbf16>
    tpu.vector_store %arg11[%c48_86, %c0_87], %78 {strides = array<i32>} : memref<72x384xbf16, #tpu.memory_space<vmem>>, vector<8x384xbf16>,
    %c1_88 = arith.constant 1 : index
    %c0_89 = arith.constant 0 : index
    %c37_90 = arith.constant 37 : index
    %80 = vector.load %arg2[%c1_88, %c0_89, %c37_90] : memref<2x8x512xbf16, #tpu.memory_space<vmem>>, vector<1x8x384xbf16>
    %81 = vector.shape_cast %80 : vector<1x8x384xbf16> to vector<8x384xbf16>
    %c56_91 = arith.constant 56 : index
    %c0_92 = arith.constant 0 : index
    %82 = vector.load %arg11[%c56_91, %c0_92] : memref<72x384xbf16, #tpu.memory_space<vmem>>, vector<8x384xbf16>
    tpu.vector_store %arg11[%c56_91, %c0_92], %81 {strides = array<i32>} : memref<72x384xbf16, #tpu.memory_space<vmem>>, vector<8x384xbf16>,
    %c1_93 = arith.constant 1 : index
    %c0_94 = arith.constant 0 : index
    %c38_95 = arith.constant 38 : index
    %83 = vector.load %arg2[%c1_93, %c0_94, %c38_95] : memref<2x8x512xbf16, #tpu.memory_space<vmem>>, vector<1x8x384xbf16>
    %84 = vector.shape_cast %83 : vector<1x8x384xbf16> to vector<8x384xbf16>
    %c64_96 = arith.constant 64 : index
    %c0_97 = arith.constant 0 : index
    %85 = vector.load %arg11[%c64_96, %c0_97] : memref<72x384xbf16, #tpu.memory_space<vmem>>, vector<8x384xbf16>
    tpu.vector_store %arg11[%c64_96, %c0_97], %84 {strides = array<i32>} : memref<72x384xbf16, #tpu.memory_space<vmem>>, vector<8x384xbf16>,
    %c0_98 = arith.constant 0 : index
    %c0_99 = arith.constant 0 : index
    %86 = vector.load %arg11[%c0_98, %c0_99] : memref<72x384xbf16, #tpu.memory_space<vmem>>, vector<72x384xbf16>
    %cst_100 = arith.constant dense<0.000000e+00> : vector<8x384xf32>
    %87 = tpu.matmul %1, %86, %cst_100 {dimension_numbers = #tpu.dot_dimension_numbers<[1], [0], [0], [1], [0, 0, 1, 1], [], []>} : vector<8x72xbf16>, vector<72x384xbf16>, vector<8x384xf32> -> vector<8x384xf32>
    %c1_101 = arith.constant 1 : index
    %c0_102 = arith.constant 0 : index
    %c0_103 = arith.constant 0 : index
    %88 = vector.load %arg5[%c1_101, %c0_102, %c0_103] : memref<2x8x1xf32, #tpu.memory_space<vmem>>, vector<1x8x1xf32>
    %89 = vector.shape_cast %88 : vector<1x8x1xf32> to vector<8x1xf32>
    %90 = arith.mulf %2, %89 : vector<8x1xf32>
    %c1_104 = arith.constant 1 : index
    %c0_105 = arith.constant 0 : index
    %c0_106 = arith.constant 0 : index
    %91 = vector.load %arg6[%c1_104, %c0_105, %c0_106] : memref<2x8x1xf32, #tpu.memory_space<vmem>>, vector<1x8x1xf32>
    %92 = vector.shape_cast %91 : vector<1x8x1xf32> to vector<8x1xf32>
    %93 = arith.addf %90, %92 : vector<8x1xf32>
    %94 = vector.broadcast %89 : vector<8x1xf32> to vector<8x384xf32>
    %95 = arith.mulf %87, %94 : vector<8x384xf32>
    %96 = vector.broadcast %93 : vector<8x1xf32> to vector<8x384xf32>
    %97 = arith.addf %95, %96 : vector<8x384xf32>
    %98 = arith.truncf %97 : vector<8x384xf32> to vector<8x384xbf16>
    %c1_107 = arith.constant 1 : index
    %c0_108 = arith.constant 0 : index
    %c0_109 = arith.constant 0 : index
    %99 = vector.load %arg8[%c1_107, %c0_108, %c0_109] : memref<2x8x384xbf16, #tpu.memory_space<vmem>>, vector<1x8x384xbf16>
    %100 = vector.shape_cast %99 : vector<1x8x384xbf16> to vector<8x384xbf16>
    %101 = vector.shape_cast %98 : vector<8x384xbf16> to vector<1x8x384xbf16>
    tpu.vector_store %arg8[%c1_107, %c0_108, %c0_109], %101 {strides = array<i32>} : memref<2x8x384xbf16, #tpu.memory_space<vmem>>, vector<1x8x384xbf16>,
    %102 = vector.broadcast %0 : vector<1x384xf32> to vector<8x384xf32>
    %103 = arith.mulf %97, %102 : vector<8x384xf32>
    %cst_110 = arith.constant dense<0.000000e+00> : vector<8xf32>
    %104 = vector.multi_reduction <add>, %103, %cst_110 [1] : vector<8x384xf32> to vector<8xf32>
    %105 = vector.shape_cast %104 : vector<8xf32> to vector<8x1xf32>
    %c1_111 = arith.constant 1 : index
    %c0_112 = arith.constant 0 : index
    %c0_113 = arith.constant 0 : index
    %106 = vector.load %arg9[%c1_111, %c0_112, %c0_113] : memref<2x8x1xf32, #tpu.memory_space<vmem>>, vector<1x8x1xf32>
    %107 = vector.shape_cast %106 : vector<1x8x1xf32> to vector<8x1xf32>
    %108 = vector.shape_cast %105 : vector<8x1xf32> to vector<1x8x1xf32>
    tpu.vector_store %arg9[%c1_111, %c0_112, %c0_113], %108 {strides = array<i32>} : memref<2x8x1xf32, #tpu.memory_space<vmem>>, vector<1x8x1xf32>,
    %109 = arith.mulf %97, %103 : vector<8x384xf32>
    %cst_114 = arith.constant dense<0.000000e+00> : vector<8xf32>
    %110 = vector.multi_reduction <add>, %109, %cst_114 [1] : vector<8x384xf32> to vector<8xf32>
    %111 = vector.shape_cast %110 : vector<8xf32> to vector<8x1xf32>
    %c1_115 = arith.constant 1 : index
    %c0_116 = arith.constant 0 : index
    %c0_117 = arith.constant 0 : index
    %112 = vector.load %arg10[%c1_115, %c0_116, %c0_117] : memref<2x8x1xf32, #tpu.memory_space<vmem>>, vector<1x8x1xf32>
    %113 = vector.shape_cast %112 : vector<1x8x1xf32> to vector<8x1xf32>
    %114 = vector.shape_cast %111 : vector<8x1xf32> to vector<1x8x1xf32>
    tpu.vector_store %arg10[%c1_115, %c0_116, %c0_117], %114 {strides = array<i32>} : memref<2x8x1xf32, #tpu.memory_space<vmem>>, vector<1x8x1xf32>,
    return
  }
  func.func @transform_0(%arg0: i32, %arg1: i32) -> (i32, i32, i32) {
    %c0_i32 = arith.constant 0 : i32
    %c0_i32_0 = arith.constant 0 : i32
    %c0_i32_1 = arith.constant 0 : i32
    return %arg0, %c0_i32, %c0_i32_0 : i32, i32, i32
  }
  func.func @transform_1(%arg0: i32, %arg1: i32) -> (i32, i32) {
    %c0_i32 = arith.constant 0 : i32
    %c0_i32_0 = arith.constant 0 : i32
    return %arg1, %c0_i32 : i32, i32
  }
  func.func @transform_2(%arg0: i32, %arg1: i32) -> (i32, i32) {
    %c0_i32 = arith.constant 0 : i32
    %c0_i32_0 = arith.constant 0 : i32
    return %arg1, %c0_i32 : i32, i32
  }
  func.func @transform_3(%arg0: i32, %arg1: i32) -> (i32, i32, i32) {
    %c0_i32 = arith.constant 0 : i32
    %c0_i32_0 = arith.constant 0 : i32
    return %arg0, %arg1, %c0_i32 : i32, i32, i32
  }
  func.func @transform_4(%arg0: i32, %arg1: i32) -> (i32, i32, i32) {
    %c0_i32 = arith.constant 0 : i32
    %c0_i32_0 = arith.constant 0 : i32
    return %arg0, %arg1, %c0_i32 : i32, i32, i32
  }
  func.func @transform_5(%arg0: i32, %arg1: i32) -> (i32, i32) {
    %c0_i32 = arith.constant 0 : i32
    %c0_i32_0 = arith.constant 0 : i32
    %c0_i32_1 = arith.constant 0 : i32
    return %c0_i32, %c0_i32_0 : i32, i32
  }
  func.func @transform_6(%arg0: i32, %arg1: i32) -> (i32, i32, i32) {
    %c0_i32 = arith.constant 0 : i32
    %c0_i32_0 = arith.constant 0 : i32
    return %arg0, %arg1, %c0_i32 : i32, i32, i32
  }
  func.func @transform_7(%arg0: i32, %arg1: i32) -> (i32, i32, i32) {
    %c0_i32 = arith.constant 0 : i32
    %c0_i32_0 = arith.constant 0 : i32
    return %arg0, %arg1, %c0_i32 : i32, i32, i32
  }
  func.func @transform_8(%arg0: i32, %arg1: i32) -> (i32, i32, i32) {
    %c0_i32 = arith.constant 0 : i32
    %c0_i32_0 = arith.constant 0 : i32
    return %arg0, %arg1, %c0_i32 : i32, i32, i32
  }
}

</mosaic_0001>

<bundles_post_ra>
// kernel: tpu_custom_call.1
= control target key start
LH: loop header
LB: loop body
LE: loop exit
PB: predicated region body
PF: predicated region fallthrough
CT: control target
= control target key end

     0   :  { %s990_s29 = smov 126   ;;  %s991_s30 = smov 127   ;;  %v992_v4 = vmov 0.0   ;;  %s1226_s0 = inlined_call_operand.vmem [shape: bf16[2,8,512], index: 0, kind: input, shape index: {}]   ;;  %s1227_s1 = inlined_call_operand.vmem [shape: bf16[8,72], index: 1, kind: input, shape index: {}]   ;;  %s1228_s2 = inlined_call_operand.vmem [shape: f32[8,1], index: 2, kind: input, shape index: {}]   ;;  %s1229_s3 = inlined_call_operand.vmem [shape: f32[2,8,1], index: 3, kind: input, shape index: {}]   ;;  %s1230_s4 = inlined_call_operand.vmem [shape: f32[2,8,1], index: 4, kind: input, shape index: {}]   ;;  %s1231_s5 = inlined_call_operand.vmem [shape: f32[1,384], index: 5, kind: input, shape index: {}]   ;;  %s1232_s6 = inlined_call_operand.hbm [shape: bf16[2,8,384], index: 6, kind: output, shape index: {0}]   ;;  %s1233_s7 = inlined_call_operand.vmem [shape: f32[2,8,1], index: 7, kind: output, shape index: {1}]   ;;  %s1234_s8 = inlined_call_operand.vmem [shape: f32[2,8,1], index: 8, kind: output, shape index: {2}]  }
   0x1   :  { %v1052_v0 = vld [vmem:[%s1226_s0] sm:$0xff]  ;;  %v1061_v1 = vld [vmem:[%s1226_s0 + $0x10] sm:$0xff]  ;;  %v55_v2 = vld [vmem:[%s1226_s0 + $0x8] sm:$0xff]  ;;  %912 = vmatprep.subr.bf16.mxu1 %v992_v4 }
   0x2   :  { %58 = vrot.lane.b32.xlu1 %v1052_v0, %s990_s29  ;;  %39 = vrot.lane.b32.xlu0 %v1052_v0, %s991_s30  ;;  %v32_v3 = vld [vmem:[%s1226_s0 + $0x8] sm:$0xf] }
   0x3   :  { %34 = vst [vmem:[#allocation2 + $0x8] sm:$0xf] %v32_v3 }
   0x4   :  { %14 = vsyncpa [#allocation4], 0  ;;  %s993_s15 = smov 110   ;;  %s994_s16 = smov 109   ;;  %v998_v5 = vmov 0   ;;  %v857_v6 = vld [vmem:[%s1226_s0 + $0x18] sm:$0xff] }
   0x5   :  { %s995_s17 = smov 108   ;;  %s996_s18 = smov 92   ;;  %316 = vmatprep.mubr.bf16.mxu0 %v998_v5  ;;  %955 = vset.pattern.permute.xlu1 %v998_v5  ;;  %vm1000_vm0 = vmmov 0   ;;  %v890_v7 = vld [vmem:[%s1229_s3 + $0x8] sm:$0xff]  ;;  %v30_v8 = vld [vmem:[%s1228_s2] sm:$0xff]  ;;  %vm65_vm1 = vcmask 1031168  }
   0x6   :  { %60 = vrot.lane.b32.xlu1 %v55_v2, %s990_s29  ;;  %41 = vrot.lane.b32.xlu0 %v55_v2, %s991_s30  ;;  %s997_s19 = smov 91   ;;  %s999_s20 = smov 90   ;;  %v365_v9 = vld [vmem:[%s1229_s3] sm:$0xff]  ;;  %v756_v10 = vmul.f32 %v890_v7, %v30_v8  ;;  %v891_v13 = vld [vmem:[%s1230_s4 + $0x8] sm:$0xff]  ;;  %vm45_vm2 = vcmask 1043456   ;;  %vm47_vm3 = vcmask 1039360  }
   0x7   :  { %954 = vset.pattern.permute.xlu0 %v998_v5  ;;  %922 = vmatprep.mubr.msk.bf16.mxu1 %vm1000_vm0, %v992_v4  ;;  %v366_v11 = vmul.f32 %v365_v9, %v30_v8  ;;  %v367_v12 = vld [vmem:[%s1230_s4] sm:$0xff]  ;;  %vm83_vm4 = vcmask 900096   ;;  %vm101_vm5 = vcmask 891904   ;;  %v855_v43 = vld [vmem:[%s1226_s0 + $0x18] sm:$0xf]  ;;  %vm119_vm6 = vcmask 883712  }
   0x8   :  { %v759_v15 = vadd.f32 %v891_v13, %v756_v10  ;;  %vm137_vm7 = vcmask 752640   ;;  %vm155_vm8 = vcmask 744448   ;;  %vm173_vm9 = vcmask 736256  }
   0x9   :  { %v368_v14 = vadd.f32 %v367_v12, %v366_v11  ;;  %vm270_vm10 = vcmask 588800  }
   0xa   :  { %78 = vrot.lane.b32.xlu1 %v55_v2, %s993_s15  ;;  %76 = vrot.lane.b32.xlu0 %v1052_v0, %s993_s15 }
   0xe   :  { %96 = vrot.lane.b32.xlu1 %v55_v2, %s994_s16  ;;  %94 = vrot.lane.b32.xlu0 %v1052_v0, %s994_s16 }
  0x12   :  { %114 = vrot.lane.b32.xlu1 %v55_v2, %s995_s17  ;;  %112 = vrot.lane.b32.xlu0 %v1052_v0, %s995_s17 }
  0x16   :  { %132 = vrot.lane.b32.xlu1 %v55_v2, %s996_s18  ;;  %130 = vrot.lane.b32.xlu0 %v1052_v0, %s996_s18 }
  0x1a   :  { %150 = vrot.lane.b32.xlu1 %v55_v2, %s997_s19  ;;  %148 = vrot.lane.b32.xlu0 %v1052_v0, %s997_s19 }
  0x1e   :  { %168 = vrot.lane.b32.xlu1 %v55_v2, %s999_s20  ;;  %166 = vrot.lane.b32.xlu0 %v1052_v0, %s999_s20 }
  0x22   :  { %444 = vrot.lane.b32.xlu1 %v857_v6, %s991_s30  ;;  %442 = vrot.lane.b32.xlu0 %v1061_v1, %s991_s30 }
  0x26   :  { %461 = vrot.lane.b32.xlu1 %v857_v6, %s990_s29  ;;  %459 = vrot.lane.b32.xlu0 %v1061_v1, %s990_s29 }
  0x2a   :  { %478 = vrot.lane.b32.xlu1 %v857_v6, %s993_s15  ;;  %476 = vrot.lane.b32.xlu0 %v1061_v1, %s993_s15 }
  0x2e   :  { %495 = vrot.lane.b32.xlu1 %v857_v6, %s994_s16  ;;  %493 = vrot.lane.b32.xlu0 %v1061_v1, %s994_s16 }
  0x32   :  { %512 = vrot.lane.b32.xlu1 %v857_v6, %s995_s17  ;;  %510 = vrot.lane.b32.xlu0 %v1061_v1, %s995_s17 }
  0x36   :  { %529 = vrot.lane.b32.xlu1 %v857_v6, %s996_s18  ;;  %527 = vrot.lane.b32.xlu0 %v1061_v1, %s996_s18 }
  0x3a   :  { %546 = vrot.lane.b32.xlu1 %v857_v6, %s997_s19  ;;  %544 = vrot.lane.b32.xlu0 %v1061_v1, %s997_s19 }
  0x3e   :  { %563 = vrot.lane.b32.xlu1 %v857_v6, %s999_s20  ;;  %561 = vrot.lane.b32.xlu0 %v1061_v1, %s999_s20 }
  0x42   :  { %762 = vperm.xlu1 %955, %v890_v7   ;;  %371 = vperm.xlu0 %954, %v365_v9  }
  0x46   :  { %379 = vperm.xlu1 %955, %v368_v14   ;;  %770 = vperm.xlu0 %954, %v759_v15  }
  0x74   :  { %v59_v16 = vpop.permute.xlu1 %58  ;;  %v40_v17 = vpop.permute.xlu0 %39 }
  0x75   :  { %v43_v18 = vrot.slane %v40_v17, 4  ;;  %v62_v23 = vrot.slane %v59_v16, 4 }
  0x78   :  { %v61_v19 = vpop.permute.xlu1 %60  ;;  %v42_v20 = vpop.permute.xlu0 %41 }
  0x79   :  { %v63_v21 = vrot.slane %v61_v19, 4  ;;  %v44_v22 = vrot.slane %v42_v20, 4 }
  0x7b   :  { %v67_v24 = vsel %vm65_vm1, %v61_v19, %v63_v21  ;;  %v46_v25 = vsel %vm45_vm2, %v43_v18, %v44_v22  ;;  %v49_v26 = vsel %vm47_vm3, %v42_v20, %v44_v22  ;;  %v64_v27 = vsel %vm45_vm2, %v62_v23, %v63_v21 }
  0x7c   :  { %71 = vst [vmem:[#allocation2 + $0x20] sm:$0xf] %v67_v24  ;;  %v48_v28 = vsel %vm47_vm3, %v40_v17, %v46_v25  ;;  %53 = vst [vmem:[#allocation2 + $0x14] sm:$0xf] %v49_v26  ;;  %v79_v29 = vpop.permute.xlu1 %78  ;;  %v77_v30 = vpop.permute.xlu0 %76  ;;  %v66_v37 = vsel %vm65_vm1, %v59_v16, %v64_v27 }
  0x7d   :  { %v81_v31 = vrot.slane %v79_v29, 4  ;;  %v80_v32 = vrot.slane %v77_v30, 4  ;;  %v835_v33 = vcombine.high %v1052_v0, %v48_v28  ;;  %v834_v34 = vcombine.low %v1052_v0, %v48_v28 }
  0x7f   :  { %v85_v35 = vsel %vm83_vm4, %v79_v29, %v81_v31  ;;  %v82_v36 = vsel %vm45_vm2, %v80_v32, %v81_v31  ;;  %284 = vmatprep.subr.bf16.mxu0 %v835_v33 }
  0x80   :  { %89 = vst [vmem:[#allocation2 + $0x2c] sm:$0xf] %v85_v35  ;;  %v84_v38 = vsel %vm83_vm4, %v77_v30, %v82_v36  ;;  %v97_v39 = vpop.permute.xlu1 %96  ;;  %v95_v40 = vpop.permute.xlu0 %94  ;;  %285 = vmatpush1.bf16.msra.mxu0 %v834_v34  ;;  %v1153_v36 = vld [vmem:[%s1227_s1] sm:$0xf] }
  0x81   :  { %v99_v41 = vrot.slane %v97_v39, 4  ;;  %v98_v42 = vrot.slane %v95_v40, 4  ;;  %v838_v44 = vcombine.high %v66_v37, %v84_v38  ;;  %v837_v45 = vcombine.low %v66_v37, %v84_v38 }
  0x83   :  { %v103_v46 = vsel %vm101_vm5, %v97_v39, %v99_v41  ;;  %v956_v47 = vld [vmem:[#allocation2 + $0x8] ss:$12 sps:$4 sm:$0xff]   ;;  %286 = vmatprep.subr.bf16.mxu0 %v838_v44  ;;  %v100_v50 = vsel %vm45_vm2, %v98_v42, %v99_v41 }
  0x84   :  { %107 = vst [vmem:[#allocation2 + $0x38] sm:$0xf] %v103_v46  ;;  %v115_v48 = vpop.permute.xlu1 %114  ;;  %v113_v49 = vpop.permute.xlu0 %112  ;;  %437 = vst [vmem:[#allocation2 + $0x8] sm:$0xf] %v855_v43  ;;  %287 = vmatpush1.bf16.msra.mxu0 %v837_v45  ;;  %913 = vmatpush3.bf16.msra.mxu1 %v956_v47  ;;  %v102_v56 = vsel %vm101_vm5, %v95_v40, %v100_v50 }
  0x85   :  { %v117_v51 = vrot.slane %v115_v48, 4  ;;  %v116_v52 = vrot.slane %v113_v49, 4  ;;  %914 = vmatprep.subr.bf16.mxu1 %v992_v4 }
  0x87   :  { %v121_v53 = vsel %vm119_vm6, %v115_v48, %v117_v51  ;;  %v118_v54 = vsel %vm45_vm2, %v116_v52, %v117_v51  ;;  %v957_v55 = vld [vmem:[#allocation2 + $0x20] ss:$12 sps:$4 sm:$0xff]  }
  0x88   :  { %125 = vst [vmem:[#allocation2 + $0x44] sm:$0xf] %v121_v53  ;;  %v120_v57 = vsel %vm119_vm6, %v113_v49, %v118_v54  ;;  %v133_v58 = vpop.permute.xlu1 %132  ;;  %v131_v59 = vpop.permute.xlu0 %130  ;;  %915 = vmatpush3.bf16.msra.mxu1 %v957_v55 }
  0x89   :  { %v135_v60 = vrot.slane %v133_v58, 4  ;;  %v134_v61 = vrot.slane %v131_v59, 4  ;;  %v841_v62 = vcombine.high %v102_v56, %v120_v57  ;;  %v840_v63 = vcombine.low %v102_v56, %v120_v57  ;;  %916 = vmatprep.subr.bf16.mxu1 %v992_v4 }
  0x8b   :  { %v139_v0 = vsel %vm137_vm7, %v133_v58, %v135_v60  ;;  %288 = vmatprep.subr.bf16.mxu0 %v841_v62  ;;  %v136_v6 = vsel %vm45_vm2, %v134_v61, %v135_v60 }
  0x8c   :  { %143 = vst [vmem:[#allocation2 + $0x50] sm:$0xf] %v139_v0  ;;  %v151_v2 = vpop.permute.xlu1 %150  ;;  %v149_v3 = vpop.permute.xlu0 %148  ;;  %289 = vmatpush1.bf16.msra.mxu0 %v840_v63  ;;  %v138_v12 = vsel %vm137_vm7, %v131_v59, %v136_v6 }
  0x8d   :  { %v153_v7 = vrot.slane %v151_v2, 4  ;;  %v152_v8 = vrot.slane %v149_v3, 4 }
  0x8f   :  { %v157_v9 = vsel %vm155_vm8, %v151_v2, %v153_v7  ;;  %v154_v10 = vsel %vm45_vm2, %v152_v8, %v153_v7  ;;  %v958_v11 = vld [vmem:[#allocation2 + $0x38] ss:$12 sps:$4 sm:$0xff]  }
  0x90   :  { %161 = vst [vmem:[#allocation2 + $0x5c] sm:$0xf] %v157_v9  ;;  %v156_v13 = vsel %vm155_vm8, %v149_v3, %v154_v10  ;;  %v169_v14 = vpop.permute.xlu1 %168  ;;  %v167_v15 = vpop.permute.xlu0 %166  ;;  %917 = vmatpush3.bf16.msra.mxu1 %v958_v11 }
  0x91   :  { %v171_v16 = vrot.slane %v169_v14, 4  ;;  %v170_v17 = vrot.slane %v167_v15, 4  ;;  %v844_v18 = vcombine.high %v138_v12, %v156_v13  ;;  %v843_v19 = vcombine.low %v138_v12, %v156_v13  ;;  %918 = vmatprep.subr.bf16.mxu1 %v992_v4 }
  0x93   :  { %v175_v20 = vsel %vm173_vm9, %v169_v14, %v171_v16  ;;  %v172_v21 = vsel %vm45_vm2, %v170_v17, %v171_v16  ;;  %290 = vmatprep.subr.bf16.mxu0 %v844_v18 }
  0x94   :  { %179 = vst [vmem:[#allocation2 + $0x68] sm:$0xf] %v175_v20  ;;  %v174_v22 = vsel %vm173_vm9, %v167_v15, %v172_v21  ;;  %v445_v23 = vpop.permute.xlu1 %444  ;;  %v443_v24 = vpop.permute.xlu0 %442  ;;  %291 = vmatpush1.bf16.msra.mxu0 %v843_v19 }
  0x95   :  { %v447_v25 = vrot.slane %v445_v23, 4  ;;  %v446_v26 = vrot.slane %v443_v24, 4  ;;  %v847_v27 = vcombine.high %v174_v22, %v174_v22  ;;  %v846_v28 = vcombine.low %v174_v22, %v174_v22 }
  0x97   :  { %v450_v29 = vsel %vm47_vm3, %v445_v23, %v447_v25  ;;  %v448_v30 = vsel %vm45_vm2, %v446_v26, %v447_v25  ;;  %v959_v31 = vld [vmem:[#allocation2 + $0x50] ss:$12 sps:$4 sm:$0xff]   ;;  %849 = vmatprep.subr.msk.bf16.mxu0 %vm45_vm2, %v847_v27  ;;  %v276_v32 = vsel %vm45_vm2, %v846_v28, 0 }
  0x98   :  { %454 = vst [vmem:[#allocation2 + $0x14] sm:$0xf] %v450_v29  ;;  %v449_v33 = vsel %vm47_vm3, %v443_v24, %v448_v30  ;;  %v462_v34 = vpop.permute.xlu1 %461  ;;  %v460_v35 = vpop.permute.xlu0 %459  ;;  %293 = vmatpush1.bf16.msra.mxu0 %v276_v32  ;;  %919 = vmatpush3.bf16.msra.mxu1 %v959_v31 }
  0x99   :  { %v464_v37 = vrot.slane %v462_v34, 4  ;;  %v463_v38 = vrot.slane %v460_v35, 4  ;;  %v872_v39 = vcombine.low %v1061_v1, %v449_v33  ;;  %v873_v40 = vcombine.high %v1061_v1, %v449_v33  ;;  %920 = vmatprep.subr.bf16.mxu1 %v992_v4 }
  0x9b   :  { %v467_v41 = vsel %vm65_vm1, %v462_v34, %v464_v37  ;;  %v465_v42 = vsel %vm45_vm2, %v463_v38, %v464_v37  ;;  %v960_v43 = vld [vmem:[#allocation2 + $0x68] ss:$0 sps:$4 sm:$0xff]   ;;  %673 = vmatprep.subr.bf16.mxu0 %v873_v40  ;;  %850 = vmatmul.mubr.msk.bf16.vlgmr.msra.gmra.mrb[0].mxu0 %vm270_vm10, %v1153_v36 }
  0x9c   :  { %471 = vst [vmem:[#allocation2 + $0x20] sm:$0xf] %v467_v41  ;;  %v466_v44 = vsel %vm65_vm1, %v460_v35, %v465_v42  ;;  %v479_v45 = vpop.permute.xlu1 %478  ;;  %v477_v46 = vpop.permute.xlu0 %476  ;;  %674 = vmatpush1.bf16.msra.mxu0 %v872_v39  ;;  %705 = vmatprep.mubr.bf16.mxu0 %v998_v5  ;;  %v282_v48 = vsel %vm45_vm2, %v960_v43, 0  ;;  %v401_v41 = vlaneseq }
  0x9d   :  { %v481_v1 = vrot.slane %v479_v45, 4  ;;  %v480_v47 = vrot.slane %v477_v46, 4  ;;  %921 = vmatpush3.bf16.msra.mxu1 %v282_v48 }
  0x9e   :  { %926 = vmatprep.subr.bf16.mxu1 %v992_v4  ;;  %v402_v42 = vshrl.u32 %v401_v41, 7 }
  0x9f   :  { %v484_v49 = vsel %vm83_vm4, %v479_v45, %v481_v1  ;;  %v482_v50 = vsel %vm45_vm2, %v480_v47, %v481_v1  ;;  %v961_v51 = vld [vmem:[#allocation2 + $0x8] ss:$12 sps:$4 sm:$0xff]  }
  0xa0   :  { %488 = vst [vmem:[#allocation2 + $0x2c] sm:$0xf] %v484_v49  ;;  %v483_v52 = vsel %vm83_vm4, %v477_v46, %v482_v50  ;;  %v496_v53 = vpop.permute.xlu1 %495  ;;  %v494_v54 = vpop.permute.xlu0 %493  ;;  %923 = vmatmul.mubr.msk.bf16.vlgmr.msra.gmra.mrb[0].mxu1 %vm270_vm10, %v1153_v36  ;;  %v28_v46 = vld [vmem:[%s1231_s5] sm:$0x7]  ;;  %s1001_s5 = smov [#allocation3]  }
  0xa1   :  { %v498_v55 = vrot.slane %v496_v53, 4  ;;  %v497_v56 = vrot.slane %v494_v54, 4  ;;  %v875_v5 = vcombine.low %v466_v44, %v483_v52  ;;  %v876_v57 = vcombine.high %v466_v44, %v483_v52  ;;  %927 = vmatpush3.bf16.msra.mxu1 %v961_v51  ;;  %936 = vmatprep.mubr.msk.bf16.mxu1 %vm1000_vm0, %v992_v4  ;;  %s815_s12 = sshll.u32 %s1001_s5, 4  ;;  %s816_s12 = int_to_ptr.vmem [resolvable:$true] %s815_s12 }
  0xa2   :  { %928 = vmatprep.subr.bf16.mxu1 %v992_v4  ;;  %v403_v44 = vsub.s32 0, %v402_v42  ;;  %s966_s13 = scalar_lea.vmem %s816_s12, 384  ;;  %p971_p1 = scmp.lt.s32.totalorder %s816_s12, %s816_s12 }
  0xa3   :  { %v501_v58 = vsel %vm101_vm5, %v496_v53, %v498_v55  ;;  %v499_v59 = vsel %vm45_vm2, %v497_v56, %v498_v55  ;;  %675 = vmatprep.subr.bf16.mxu0 %v876_v57  ;;  %v411_v55 = vsub.s32 2, %v402_v42  ;;  %p967_p0 = scmp.ne.s32.totalorder %s816_s12, %s966_s13  ;;  %p972_p2 = scmp.lt.s32.totalorder %s966_s13, %s966_s13 }
  0xa4   :  { %505 = vst [vmem:[#allocation2 + $0x38] sm:$0xf] %v501_v58  ;;  %v500_v60 = vsel %vm101_vm5, %v494_v54, %v499_v59  ;;  %v513_v61 = vpop.permute.xlu1 %512  ;;  %v511_v62 = vpop.permute.xlu0 %510  ;;  %676 = vmatpush1.bf16.msra.mxu0 %v875_v5  ;;  %v404_v50 = vrot.slane %v28_v46, %v403_v44 }
  0xa5   :  { %v515_v63 = vrot.slane %v513_v61, 4  ;;  %v514_v0 = vrot.slane %v511_v62, 4  ;;  %p973_p3 = por %p972_p2, %p971_p1 }
  0xa7   :  { %v518_v2 = vsel %vm119_vm6, %v513_v61, %v515_v63  ;;  %v516_v3 = vsel %vm45_vm2, %v514_v0, %v515_v63  ;;  %v962_v6 = vld [vmem:[#allocation2 + $0x20] ss:$12 sps:$4 sm:$0xff]   ;;  %p974_p4 = pnand %p973_p3, %p967_p0 }
  0xa8   :  { %522 = vst [vmem:[#allocation2 + $0x44] sm:$0xf] %v518_v2  ;;  %v517_v7 = vsel %vm119_vm6, %v511_v62, %v516_v3  ;;  %v530_v8 = vpop.permute.xlu1 %529  ;;  %v528_v9 = vpop.permute.xlu0 %527  ;;  %929 = vmatpush3.bf16.msra.mxu1 %v962_v6  ;;  %v412_v62 = vrot.slane %v28_v46, %v411_v55 }
  0xa9   :  { %v532_v10 = vrot.slane %v530_v8, 4  ;;  %v531_v11 = vrot.slane %v528_v9, 4  ;;  %v878_v12 = vcombine.low %v500_v60, %v517_v7  ;;  %v879_v13 = vcombine.high %v500_v60, %v517_v7  ;;  %930 = vmatprep.subr.bf16.mxu1 %v992_v4 }
  0xab   :  { %v535_v14 = vsel %vm137_vm7, %v530_v8, %v532_v10  ;;  %v533_v15 = vsel %vm45_vm2, %v531_v11, %v532_v10  ;;  %677 = vmatprep.subr.bf16.mxu0 %v879_v13 }
  0xac   :  { %539 = vst [vmem:[#allocation2 + $0x50] sm:$0xf] %v535_v14  ;;  %v534_v16 = vsel %vm137_vm7, %v528_v9, %v533_v15  ;;  %v547_v17 = vpop.permute.xlu1 %546  ;;  %v545_v18 = vpop.permute.xlu0 %544  ;;  %678 = vmatpush1.bf16.msra.mxu0 %v878_v12 }
  0xad   :  { %v549_v19 = vrot.slane %v547_v17, 4  ;;  %v548_v20 = vrot.slane %v545_v18, 4 }
  0xaf   :  { %v552_v21 = vsel %vm155_vm8, %v547_v17, %v549_v19  ;;  %v550_v22 = vsel %vm45_vm2, %v548_v20, %v549_v19  ;;  %v963_v23 = vld [vmem:[#allocation2 + $0x38] ss:$12 sps:$4 sm:$0xff]  }
  0xb0   :  { %556 = vst [vmem:[#allocation2 + $0x5c] sm:$0xf] %v552_v21  ;;  %v551_v24 = vsel %vm155_vm8, %v545_v18, %v550_v22  ;;  %v564_v25 = vpop.permute.xlu1 %563  ;;  %v562_v26 = vpop.permute.xlu0 %561  ;;  %931 = vmatpush3.bf16.msra.mxu1 %v963_v23 }
  0xb1   :  { %v566_v27 = vrot.slane %v564_v25, 4  ;;  %v565_v28 = vrot.slane %v562_v26, 4  ;;  %v881_v29 = vcombine.low %v534_v16, %v551_v24  ;;  %v882_v30 = vcombine.high %v534_v16, %v551_v24  ;;  %932 = vmatprep.subr.bf16.mxu1 %v992_v4 }
  0xb3   :  { %v569_v31 = vsel %vm173_vm9, %v564_v25, %v566_v27  ;;  %v567_v32 = vsel %vm45_vm2, %v565_v28, %v566_v27  ;;  %679 = vmatprep.subr.bf16.mxu0 %v882_v30 }
  0xb4   :  { %573 = vst [vmem:[#allocation2 + $0x68] sm:$0xf] %v569_v31  ;;  %v568_v33 = vsel %vm173_vm9, %v562_v26, %v567_v32  ;;  %680 = vmatpush1.bf16.msra.mxu0 %v881_v29 }
  0xb5   :  { %v885_v34 = vcombine.high %v568_v33, %v568_v33  ;;  %v884_v35 = vcombine.low %v568_v33, %v568_v33 }
  0xb7   :  { %v964_v37 = vld [vmem:[#allocation2 + $0x50] ss:$12 sps:$4 sm:$0xff]   ;;  %887 = vmatprep.subr.msk.bf16.mxu0 %vm45_vm2, %v885_v34  ;;  %v665_v38 = vsel %vm45_vm2, %v884_v35, 0 }
  0xb8   :  { %682 = vmatpush1.bf16.msra.mxu0 %v665_v38  ;;  %933 = vmatpush3.bf16.msra.mxu1 %v964_v37 }
  0xb9   :  { %934 = vmatprep.subr.bf16.mxu1 %v992_v4  ;;  %v407_v4 = vsub.s32 1, %v402_v42 }
  0xbb   :  { %v965_v39 = vld [vmem:[#allocation2 + $0x68] ss:$0 sps:$4 sm:$0xff]   ;;  %888 = vmatmul.mubr.msk.bf16.vlgmr.msra.gmra.mrb[4].mxu0 %vm270_vm10, %v1153_v36  ;;  %v408_v53 = vrot.slane %v28_v46, %v407_v4 }
  0xbc   :  { %v671_v40 = vsel %vm45_vm2, %v965_v39, 0 }
  0xbd   :  { %935 = vmatpush3.bf16.msra.mxu1 %v671_v40 }
  0xc0   :  { %937 = vmatmul.mubr.msk.bf16.vlgmr.msra.gmra.mrb[4].mxu1 %vm270_vm10, %v1153_v36 }
  0xc1   :  { %v763_v43 = vpop.permute.xlu1 %762  ;;  %v372_v45 = vpop.permute.xlu0 %371 }
  0xc5   :  { %v380_v47 = vpop.permute.xlu1 %379  ;;  %v771_v17 = vpop.permute.xlu0 %770 }
 0x16e   :  { %v318_v1 = vpop.f32.mrb[0].mxu0 }
 0x16f   :  { %v374_v48 = vmul.f32 %v372_v45, %v318_v1  ;;  %v320_v49 = vpop.f32.mrb[1].mxu0 }
 0x170   :  { %v375_v51 = vmul.f32 %v372_v45, %v320_v49  ;;  %v322_v52 = vpop.f32.mrb[2].mxu0 }
 0x171   :  { %v382_v54 = vadd.f32 %v380_v47, %v374_v48  ;;  %v323_v36 = vpop.f32.mrb[3].mxu0 }
 0x172   :  { %v383_v56 = vadd.f32 %v380_v47, %v375_v51 }
 0x173   :  { %v416_v5 = vmul.f32 %v404_v50, %v382_v54  ;;  %v359_v58 = vpop.f32.mrb[0].mxu1 }
 0x174   :  { %v896_v57 = vpack.c.bf16 %v383_v56, %v382_v54  ;;  %v417_v59 = vmul.f32 %v408_v53, %v383_v56  ;;  %v376_v60 = vmul.f32 %v372_v45, %v359_v58  ;;  %v924_v61 = vpop.f32.mrb[1].mxu1 }
 0x175   :  { %v425_v63 = vmul.f32 %v416_v5, %v382_v54  ;;  %v362_v0 = vpop.f32.mrb[2].mxu1 }
 0x176   :  { %398 = vst [vmem:[#allocation3] sm:$0xff] %v896_v57  ;;  %v426_v2 = vmul.f32 %v417_v59, %v383_v56  ;;  %v419_v3 = vadd.f32 %v417_v59, %v416_v5  ;;  %v384_v6 = vadd.f32 %v380_v47, %v376_v60  ;;  %v925_v7 = vpop.f32.mrb[3].mxu1 }
 0x178   :  { %v428_v8 = vadd.f32 %v426_v2, %v425_v63  ;;  %v897_v9 = vpack.c.bf16 %v384_v6, %v384_v6  ;;  %v418_v10 = vmul.f32 %v412_v62, %v384_v6 }
 0x17a   :  { %399 = vst [vmem:[#allocation3 + $0x8] sm:$0xf] %v897_v9  ;;  %v427_v11 = vmul.f32 %v418_v10, %v384_v6  ;;  %v420_v12 = vadd.f32 %v419_v3, %v418_v10 }
 0x17c   :  { %v429_v13 = vadd.f32 %v428_v8, %v427_v11  ;;  %421 = vadd.xlane.f32.xlu1 %v420_v12 }
 0x17e   :  { %430 = vadd.xlane.f32.xlu0 %v429_v13 }
 0x18e   :  { %v707_v14 = vpop.f32.mrb[4].mxu0 }
 0x18f   :  { %v765_v15 = vmul.f32 %v763_v43, %v707_v14  ;;  %v709_v16 = vpop.f32.mrb[5].mxu0 }
 0x190   :  { %v766_v18 = vmul.f32 %v763_v43, %v709_v16  ;;  %v711_v19 = vpop.f32.mrb[6].mxu0 }
 0x191   :  { %v773_v20 = vadd.f32 %v771_v17, %v765_v15  ;;  %v712_v21 = vpop.f32.mrb[7].mxu0 }
 0x192   :  { %v774_v22 = vadd.f32 %v771_v17, %v766_v18 }
 0x193   :  { %v792_v23 = vmul.f32 %v773_v20, %v404_v50  ;;  %v748_v24 = vpop.f32.mrb[4].mxu1 }
 0x194   :  { %v898_v25 = vpack.c.bf16 %v774_v22, %v773_v20  ;;  %v793_v26 = vmul.f32 %v774_v22, %v408_v53  ;;  %v767_v27 = vmul.f32 %v763_v43, %v748_v24  ;;  %v938_v28 = vpop.f32.mrb[5].mxu1 }
 0x195   :  { %v801_v29 = vmul.f32 %v792_v23, %v773_v20  ;;  %v751_v30 = vpop.f32.mrb[6].mxu1 }
 0x196   :  { %790 = vst [vmem:[#allocation3 + $0xc] sm:$0xff] %v898_v25  ;;  %v795_v31 = vadd.f32 %v793_v26, %v792_v23  ;;  %v802_v32 = vmul.f32 %v793_v26, %v774_v22  ;;  %v775_v33 = vadd.f32 %v771_v17, %v767_v27  ;;  %v939_v34 = vpop.f32.mrb[7].mxu1 }
 0x198   :  { %v804_v35 = vadd.f32 %v802_v32, %v801_v29  ;;  %v899_v37 = vpack.c.bf16 %v775_v33, %v775_v33  ;;  %v794_v38 = vmul.f32 %v775_v33, %v412_v62 }
 0x19a   :  { %791 = vst [vmem:[#allocation3 + $0x14] sm:$0xf] %v899_v37  ;;  %v796_v39 = vadd.f32 %v795_v31, %v794_v38  ;;  %v803_v40 = vmul.f32 %v794_v38, %v775_v33 }
 0x19c   :  { %797 = vadd.xlane.f32.xlu0 %v796_v39  ;;  %v805_v41 = vadd.f32 %v804_v35, %v803_v40 }
 0x19e   :  { %806 = vadd.xlane.f32.xlu1 %v805_v41 }
 0x19f   :  { %977 = shalt.err (!%p974_p4)
}
 0x1a0   :  { %s978_s16 = scalar_lea.hbm %s1232_s6, 384 }
 0x1a1   :  { %p979_p5 = scmp.ne.s32.totalorder %s1232_s6, %s978_s16  ;;  %p982_p6 = scmp.lt.u32.totalorder %s978_s16, %s1232_s6 }
 0x1a3   :  { %p984_p7 = pnand %p982_p6, %p979_p5 }
 0x1a5   :  { %987 = shalt.err (!%p984_p7)
}
 0x1a6   :  { %s1002_s21 = smov 192   ;;  %s1003_s22 = smov 12   ;;  %vm423_vm11 = vcmask 7168  }
 0x1a7   :  { %821 = dma.vmem_to_hbm [thread:$0]  %s816_s12, 384, %s1232_s6, [#allocation4], %s1002_s21, %s1002_s21, %s1003_s22  }
 0x209   :  { %v422_v42 = vpop.xlane.xlu1 %421 }
 0x20a   :  { %424 = vst.msk [vmem:[%s1233_s7] sm:$0xff] %vm423_vm11, %v422_v42 }
 0x20b   :  { %v431_v43 = vpop.xlane.xlu0 %430 }
 0x20c   :  { %432 = vst.msk [vmem:[%s1234_s8] sm:$0xff] %vm423_vm11, %v431_v43 }
 0x229   :  { %v798_v44 = vpop.xlane.xlu0 %797 }
 0x22a   :  { %894 = vst.msk [vmem:[%s1233_s7 + $0x8] sm:$0xff] %vm423_vm11, %v798_v44 }
 0x22b   :  { %v807_v45 = vpop.xlane.xlu1 %806 }
 0x22c   :  { %895 = vst.msk [vmem:[%s1234_s8 + $0x8] sm:$0xff] %vm423_vm11, %v807_v45 }
 0x22d   :  { %988 = dma.done.wait [#allocation4], 384  }
 0x22e   :  { %989 = vsyncadd [#allocation4], 4294966912 }
 0x22f   :  { %833 = vsyncpa [#allocation4], 1 }

</bundles_post_ra>
